<compile_context>
chip_gen: v7x
topology: tpu7x:2x2x1
jax: 0.10.0
libtpu: 0.0.40
codegen_flags: <defaults>
</compile_context>

<pallas_src>
import math
from functools import partial

import jax
import jax.numpy as jnp
from jax.experimental import pallas as pl
from jax.experimental.pallas import tpu as pltpu

_LANE = 128
_SUBLANE = 8


def _round_up(x, m):
    return ((x + m - 1) // m) * m


def _fused_ff_kernel(n_layers, matmul_dtype, x_ref, *refs):
    """Chained Linear+tanh layers on one (TM, F) row tile.

    refs = (w_0, b_0, w_1, b_1, ..., w_{L-1}, b_{L-1}, o_ref)
      x_ref : (TM, F)              one M-tile of the input (F un-padded)
      w_i   : (Fin_i, H_i_pad)     resident, full-extent, stored in matmul_dtype
      b_i   : (1, H_i_pad)         resident, full-extent, f32
      o_ref : (TM, H_last_pad)
    """
    o_ref = refs[-1]
    params = refs[:-1]
    x = x_ref[...].astype(matmul_dtype)
    for layer in range(n_layers):
        w = params[2 * layer][...]          # already matmul_dtype (no per-iter cast)
        b = params[2 * layer + 1][...]      # f32
        acc = jnp.dot(x, w, preferred_element_type=jnp.float32)   # MXU, f32 acc
        h = jnp.tanh(acc + b)               # f32 bias add (VPU) + tanh (EUP)
        x = h.astype(matmul_dtype) if layer + 1 < n_layers else h
    o_ref[...] = x.astype(o_ref.dtype)


def _ff_fused(x2d, weights, biases, hidden_pad, *, out_features,
              block_m=None, matmul_dtype=jnp.float32):
    """Run the whole FF stack on a 2-D (M, F) input with one pallas_call."""
    M, F = x2d.shape
    n_layers = len(weights)
    h_last_pad = hidden_pad[-1]
    f_lane = _round_up(F, _LANE)            # VMEM lane footprint of the x tile

    # ---- resident-parameter VMEM footprint -----------------------------------
    w_bytes = 0
    for w, b in zip(weights, biases):
        w_bytes += _round_up(w.shape[0], _SUBLANE) * w.shape[1] * w.dtype.itemsize
        w_bytes += _SUBLANE * b.shape[1] * b.dtype.itemsize

    # ---- choose the M tile size from a VMEM budget (v7x-safe: 64 MiB VMEM) ---
    # double-buffered x tile + double-buffered out tile + in-kernel activations
    per_row = (4 * (2 * f_lane + 2 * h_last_pad)
               + 4 * (f_lane + sum(hidden_pad))
               + 4 * max([f_lane] + list(hidden_pad)))
    vmem_budget = 40 << 20                  # headroom under v7x's 64 MiB per core
    if block_m is None:
        tm = (vmem_budget - w_bytes) // per_row
        tm = max(_SUBLANE, min(1024, (tm // _SUBLANE) * _SUBLANE))
    else:
        tm = max(_SUBLANE, _round_up(block_m, _SUBLANE))
    tm = min(tm, _round_up(M, _SUBLANE))

    # Sublane-align the row axis only when strictly necessary (rare & tiny).
    m_arr = M
    x_in = x2d
    if M % _SUBLANE != 0:
        m_arr = _round_up(M, _SUBLANE)
        x_in = jnp.zeros((m_arr, F), x2d.dtype).at[:M].set(x2d)

    grid = (pl.cdiv(m_arr, tm),)            # partial last block handled by Pallas

    in_specs = [pl.BlockSpec((tm, F), lambda i: (i, 0))]
    flat_params = []
    for w, b in zip(weights, biases):
        in_specs.append(pl.BlockSpec(w.shape, lambda i: (0, 0)))   # resident
        in_specs.append(pl.BlockSpec(b.shape, lambda i: (0, 0)))   # resident
        flat_params.extend((w, b))
    out_spec = pl.BlockSpec((tm, h_last_pad), lambda i: (i, 0))

    # advisory cost estimate for the XLA scheduler (use true, un-padded dims)
    flops = 0
    fin = F
    for w in weights:
        h = w.shape[1]
        flops += 2 * M * fin * h
        fin = h
    transcendentals = M * sum(int(w.shape[1]) for w in weights)
    bytes_accessed = (x2d.dtype.itemsize * M * F
                      + 4 * M * h_last_pad
                      + sum(int(w.size) * w.dtype.itemsize for w in weights)
                      + sum(int(b.size) * b.dtype.itemsize for b in biases))

    vmem_limit = int(min(48 << 20, max(32 << 20, 2 * (w_bytes + tm * per_row))))

    out_p = pl.pallas_call(
        partial(_fused_ff_kernel, n_layers, matmul_dtype),
        out_shape=jax.ShapeDtypeStruct((m_arr, h_last_pad), x2d.dtype),
        grid=grid,
        in_specs=in_specs,
        out_specs=out_spec,
        compiler_params=pltpu.CompilerParams(
            dimension_semantics=("parallel",),   # row tiles are independent
            vmem_limit_bytes=vmem_limit,
        ),
        cost_estimate=pl.CostEstimate(
            flops=int(flops),
            transcendentals=int(transcendentals),
            bytes_accessed=int(bytes_accessed),
        ),
    )(x_in, *flat_params)

    return out_p[:M, :out_features]


class FF:
    """JAX/Pallas port of the PyTorch FF module (Linear+tanh stack)."""

    def __init__(self, n_features, hidden_size=(16,), key=None,
                 dtype=jnp.float32, block_m=None, matmul_dtype=jnp.float32):
        if key is None:
            key = jax.random.PRNGKey(0)
        self.n_features = n_features
        self.hidden_size = list(hidden_size)
        self.block_m = block_m
        self.matmul_dtype = matmul_dtype

        self.params = []          # unpadded (W[(in,out)], b[(out,)]) for reference
        self._w_kernel = []       # kernel weights: (fan_in_eff, h_pad), matmul_dtype
        self._b_kernel = []       # kernel biases : (1, h_pad), f32
        self._hidden_pad = [_round_up(h, _LANE) for h in self.hidden_size]

        fan_in = n_features
        fan_in_eff = n_features   # layer 0 consumes the UN-padded input width
        for h, h_pad in zip(self.hidden_size, self._hidden_pad):
            key, kw, kb = jax.random.split(key, 3)
            bound = 1.0 / math.sqrt(fan_in)
            # mimic nn.Linear default init: U(-1/sqrt(fan_in), 1/sqrt(fan_in))
            w = jax.random.uniform(kw, (fan_in, h), dtype, -bound, bound)
            b = jax.random.uniform(kb, (h,), dtype, -bound, bound)
            self.params.append((w, b))
            w_pad = (jnp.zeros((fan_in_eff, h_pad), jnp.float32)
                     .at[:fan_in, :h].set(w.astype(jnp.float32))
                     .astype(matmul_dtype))
            b_pad = jnp.zeros((1, h_pad), jnp.float32).at[0, :h].set(
                b.astype(jnp.float32))
            self._w_kernel.append(w_pad)
            self._b_kernel.append(b_pad)
            fan_in, fan_in_eff = h, h_pad   # subsequent layers see padded widths

    @property
    def dimension(self):
        return self.hidden_size[-1] if self.hidden_size else self.n_features

    def __call__(self, features):
        # features: (B, T, F) or (B, F)
        if not self.hidden_size:
            return features
        orig_shape = features.shape
        x = features.reshape(-1, orig_shape[-1])  # (M, F)
        y = _ff_fused(
            x, self._w_kernel, self._b_kernel, self._hidden_pad,
            out_features=self.hidden_size[-1],
            block_m=self.block_m, matmul_dtype=self.matmul_dtype,
        )
        return y.reshape(*orig_shape[:-1], y.shape[-1])


def _reference(features, params):
    x = features
    for w, b in params:
        x = jnp.tanh(jnp.matmul(x, w) + b)
    return x


if __name__ == "__main__":
    key = jax.random.PRNGKey(0)
    k_in, k_params, k_big = jax.random.split(key, 3)

    batch, n_samples, n_features = 2, 8, 32
    hidden_size = [64, 16]

    features = jax.random.normal(k_in, (batch, n_samples, n_features), jnp.float32)

    ff = FF(n_features, hidden_size, key=k_params)
    out = jax.block_until_ready(ff(features))
    assert out.shape == (batch, n_samples, hidden_size[-1]), out.shape
    ref = _reference(features, ff.params)
    assert jnp.allclose(out, ref, atol=1e-5, rtol=1e-5), "mismatch vs reference (3-D)"

    # 2-D (batch, n_features) input path (tiny M, sublane-padded internally)
    feats2d = jax.random.normal(jax.random.PRNGKey(1), (batch, n_features), jnp.float32)
    out2d = jax.block_until_ready(ff(feats2d))
    assert out2d.shape == (batch, hidden_size[-1]), out2d.shape
    ref2d = _reference(feats2d, ff.params)
    assert jnp.allclose(out2d, ref2d, atol=1e-5, rtol=1e-5), "mismatch vs reference (2-D)"

    # multi-tile grid with a partial last block: M = 600 rows, block_m=128 -> 5 tiles
    ff_tiled = FF(n_features, hidden_size, key=k_params, block_m=128)
    big = jax.random.normal(k_big, (3, 200, n_features), jnp.float32)
    out_big = jax.block_until_ready(ff_tiled(big))
    ref_big = _reference(big, ff_tiled.params)
    assert out_big.shape == (3, 200, hidden_size[-1]), out_big.shape
    assert jnp.allclose(out_big, ref_big, atol=1e-5, rtol=1e-5), "mismatch vs reference (tiled)"

    # M not a multiple of 8 (3*70 = 210 rows) -> sublane-pad fallback path
    odd = jax.random.normal(jax.random.PRNGKey(2), (3, 70, n_features), jnp.float32)
    out_odd = jax.block_until_ready(ff(odd))
    ref_odd = _reference(odd, ff.params)
    assert out_odd.shape == (3, 70, hidden_size[-1]), out_odd.shape
    assert jnp.allclose(out_odd, ref_odd, atol=1e-5, rtol=1e-5), "mismatch vs reference (odd M)"

    # bf16 MXU-input path (v6e/v7x optimization); f32 accumulate, loose tolerance
    ff_bf16 = FF(n_features, hidden_size, key=k_params, matmul_dtype=jnp.bfloat16)
    out_bf16 = jax.block_until_ready(ff_bf16(features))
    assert jnp.allclose(out_bf16, ref, atol=6e-2), "mismatch vs reference (bf16 MXU)"

    print("KERNEL_OK")
</pallas_src>

<mosaic_0001>
module attributes {stable_mosaic.version = 11 : i64} {
  func.func @_fused_ff_kernel(%arg0: i32, %arg1: memref<16x32xf32, #tpu.memory_space<vmem>>, %arg2: memref<32x128xf32, #tpu.memory_space<vmem>>, %arg3: memref<1x128xf32, #tpu.memory_space<vmem>>, %arg4: memref<128x128xf32, #tpu.memory_space<vmem>>, %arg5: memref<1x128xf32, #tpu.memory_space<vmem>>, %arg6: memref<16x128xf32, #tpu.memory_space<vmem>>) attributes {dimension_semantics = [#tpu.dimension_semantics<parallel>], iteration_bounds = array<i64: 1>, scalar_prefetch = 0 : i64, scratch_operands = 0 : i64, tpu.core_type = #tpu.core_type<tc>, window_params = [{transform_indices = @transform_0, window_bounds = array<i64: 16, 32>}, {pipeline_mode = #tpu.pipeline_mode<synchronous>, transform_indices = @transform_1, window_bounds = array<i64: 32, 128>}, {pipeline_mode = #tpu.pipeline_mode<synchronous>, transform_indices = @transform_2, window_bounds = array<i64: 1, 128>}, {pipeline_mode = #tpu.pipeline_mode<synchronous>, transform_indices = @transform_3, window_bounds = array<i64: 128, 128>}, {pipeline_mode = #tpu.pipeline_mode<synchronous>, transform_indices = @transform_4, window_bounds = array<i64: 1, 128>}, {transform_indices = @transform_5, window_bounds = array<i64: 16, 128>}]} {
    %c0 = arith.constant 0 : index
    %c0_0 = arith.constant 0 : index
    %0 = vector.load %arg1[%c0, %c0_0] : memref<16x32xf32, #tpu.memory_space<vmem>>, vector<16x32xf32>
    %c0_1 = arith.constant 0 : index
    %c0_2 = arith.constant 0 : index
    %1 = vector.load %arg2[%c0_1, %c0_2] : memref<32x128xf32, #tpu.memory_space<vmem>>, vector<32x128xf32>
    %c0_3 = arith.constant 0 : index
    %c0_4 = arith.constant 0 : index
    %2 = vector.load %arg3[%c0_3, %c0_4] : memref<1x128xf32, #tpu.memory_space<vmem>>, vector<1x128xf32>
    %cst = arith.constant dense<0.000000e+00> : vector<16x128xf32>
    %3 = tpu.matmul %0, %1, %cst {dimension_numbers = #tpu.dot_dimension_numbers<[1], [0], [0], [1], [0, 0, 1, 1], [], []>} : vector<16x32xf32>, vector<32x128xf32>, vector<16x128xf32> -> vector<16x128xf32>
    %4 = vector.broadcast %2 : vector<1x128xf32> to vector<16x128xf32>
    %5 = arith.addf %3, %4 : vector<16x128xf32>
    %6 = math.tanh %5 : vector<16x128xf32>
    %c0_5 = arith.constant 0 : index
    %c0_6 = arith.constant 0 : index
    %7 = vector.load %arg4[%c0_5, %c0_6] : memref<128x128xf32, #tpu.memory_space<vmem>>, vector<128x128xf32>
    %c0_7 = arith.constant 0 : index
    %c0_8 = arith.constant 0 : index
    %8 = vector.load %arg5[%c0_7, %c0_8] : memref<1x128xf32, #tpu.memory_space<vmem>>, vector<1x128xf32>
    %cst_9 = arith.constant dense<0.000000e+00> : vector<16x128xf32>
    %9 = tpu.matmul %6, %7, %cst_9 {dimension_numbers = #tpu.dot_dimension_numbers<[1], [0], [0], [1], [0, 0, 1, 1], [], []>} : vector<16x128xf32>, vector<128x128xf32>, vector<16x128xf32> -> vector<16x128xf32>
    %10 = vector.broadcast %8 : vector<1x128xf32> to vector<16x128xf32>
    %11 = arith.addf %9, %10 : vector<16x128xf32>
    %12 = math.tanh %11 : vector<16x128xf32>
    %c0_10 = arith.constant 0 : index
    %c0_11 = arith.constant 0 : index
    %13 = vector.load %arg6[%c0_10, %c0_11] : memref<16x128xf32, #tpu.memory_space<vmem>>, vector<16x128xf32>
    tpu.vector_store %arg6[%c0_10, %c0_11], %12 {strides = array<i32>} : memref<16x128xf32, #tpu.memory_space<vmem>>, vector<16x128xf32>,
    return
  }
  func.func @transform_0(%arg0: i32) -> (i32, i32) {
    %c0_i32 = arith.constant 0 : i32
    %c0_i32_0 = arith.constant 0 : i32
    return %arg0, %c0_i32 : i32, i32
  }
  func.func @transform_1(%arg0: i32) -> (i32, i32) {
    %c0_i32 = arith.constant 0 : i32
    %c0_i32_0 = arith.constant 0 : i32
    %c0_i32_1 = arith.constant 0 : i32
    return %c0_i32, %c0_i32_0 : i32, i32
  }
  func.func @transform_2(%arg0: i32) -> (i32, i32) {
    %c0_i32 = arith.constant 0 : i32
    %c0_i32_0 = arith.constant 0 : i32
    %c0_i32_1 = arith.constant 0 : i32
    return %c0_i32, %c0_i32_0 : i32, i32
  }
  func.func @transform_3(%arg0: i32) -> (i32, i32) {
    %c0_i32 = arith.constant 0 : i32
    %c0_i32_0 = arith.constant 0 : i32
    %c0_i32_1 = arith.constant 0 : i32
    return %c0_i32, %c0_i32_0 : i32, i32
  }
  func.func @transform_4(%arg0: i32) -> (i32, i32) {
    %c0_i32 = arith.constant 0 : i32
    %c0_i32_0 = arith.constant 0 : i32
    %c0_i32_1 = arith.constant 0 : i32
    return %c0_i32, %c0_i32_0 : i32, i32
  }
  func.func @transform_5(%arg0: i32) -> (i32, i32) {
    %c0_i32 = arith.constant 0 : i32
    %c0_i32_0 = arith.constant 0 : i32
    return %arg0, %c0_i32 : i32, i32
  }
}

</mosaic_0001>

<bundles_post_ra>
// kernel: tpu_custom_call.1
= control target key start
LH: loop header
LB: loop body
LE: loop exit
PB: predicated region body
PF: predicated region fallthrough
CT: control target
= control target key end

     0   :  { %10 = vsyncpa [#allocation3], 0  ;;  %s612_s0 = inlined_call_operand.hbm [shape: f32[16,32], index: 0, kind: input, shape index: {}]   ;;  %s613_s1 = inlined_call_operand.hbm [shape: f32[32,128], index: 1, kind: input, shape index: {}]   ;;  %s614_s2 = inlined_call_operand.vmem [shape: f32[1,128], index: 2, kind: input, shape index: {}]   ;;  %s615_s3 = inlined_call_operand.hbm [shape: f32[128,128], index: 3, kind: input, shape index: {}]   ;;  %s616_s4 = inlined_call_operand.vmem [shape: f32[1,128], index: 4, kind: input, shape index: {}]   ;;  %s617_s5 = inlined_call_operand.hbm [shape: f32[16,128], index: 5, kind: output, shape index: {}]  }
   0x1   :  { %11 = vsyncpa [#allocation6], 0 }
   0x2   :  { %12 = vsyncpa [#allocation4], 0  ;;  %s501_s18 = smov [#allocation5]   ;;  %s502_s20 = smov [#allocation2]  }
   0x3   :  { %s30_s19 = sshll.u32 %s501_s18, 4  ;;  %s18_s21 = sshll.u32 %s502_s20, 4  ;;  %s31_s19 = int_to_ptr.vmem [resolvable:$true] %s30_s19  ;;  %s537_s21 = int_to_ptr.vmem [resolvable:$true] %s18_s21 }
   0x4   :  { %s407_s24 = scalar_lea.hbm %s613_s1, 512 }
   0x5   :  { %p408_p0 = scmp.ne.s32.totalorder %s613_s1, %s407_s24  ;;  %p411_p1 = scmp.lt.u32.totalorder %s407_s24, %s613_s1 }
   0x7   :  { %p413_p2 = pnand %p411_p1, %p408_p0 }
   0x9   :  { %416 = shalt.err (!%p413_p2)
}
   0xa   :  { %s417_s29 = scalar_lea.vmem %s31_s19, 512  ;;  %p422_p4 = scmp.lt.s32.totalorder %s31_s19, %s31_s19 }
   0xb   :  { %p418_p3 = scmp.ne.s32.totalorder %s31_s19, %s417_s29  ;;  %p423_p5 = scmp.lt.s32.totalorder %s417_s29, %s417_s29 }
   0xd   :  { %p424_p6 = por %p423_p5, %p422_p4 }
   0xf   :  { %p425_p7 = pnand %p424_p6, %p418_p3 }
  0x11   :  { %428 = shalt.err (!%p425_p7)
}
  0x12   :  { %s503_s30 = smov 128   ;;  %s504_s6 = smov 8  }
  0x13   :  { %36 = dma.hbm_to_vmem [thread:$0]  %s613_s1, 512, %s31_s19, [#allocation6], %s503_s30, %s503_s30, %s504_s6  }
  0x14   :  { %s429_s11 = scalar_lea.hbm %s612_s0, 256 }
  0x15   :  { %p430_p8 = scmp.ne.s32.totalorder %s612_s0, %s429_s11  ;;  %p433_p9 = scmp.lt.u32.totalorder %s429_s11, %s612_s0 }
  0x17   :  { %p435_p10 = pnand %p433_p9, %p430_p8 }
  0x19   :  { %438 = shalt.err (!%p435_p10)
}
  0x1a   :  { %s439_s16 = scalar_lea.vmem %s537_s21, 256  ;;  %p444_p12 = scmp.lt.s32.totalorder %s537_s21, %s537_s21 }
  0x1b   :  { %p440_p11 = scmp.ne.s32.totalorder %s537_s21, %s439_s16  ;;  %p445_p13 = scmp.lt.s32.totalorder %s439_s16, %s439_s16 }
  0x1d   :  { %p446_p0 = por %p445_p13, %p444_p12 }
  0x1f   :  { %p447_p1 = pnand %p446_p0, %p440_p11 }
  0x21   :  { %450 = shalt.err (!%p447_p1)
}
  0x22   :  { %24 = dma.hbm_to_vmem [thread:$0]  %s612_s0, 256, %s537_s21, [#allocation3], %s503_s30, %s503_s30, %s504_s6  }
  0x23   :  { %s505_s18 = smov [#allocation7]   ;;  %s451_s23 = scalar_lea.hbm %s615_s3, 2048 }
  0x24   :  { %s44_s19 = sshll.u32 %s505_s18, 4  ;;  %p452_p2 = scmp.ne.s32.totalorder %s615_s3, %s451_s23  ;;  %s45_s19 = int_to_ptr.vmem [resolvable:$true] %s44_s19 }
  0x25   :  { %p455_p3 = scmp.lt.u32.totalorder %s451_s23, %s615_s3 }
  0x27   :  { %p457_p4 = pnand %p455_p3, %p452_p2 }
  0x29   :  { %460 = shalt.err (!%p457_p4)
}
  0x2a   :  { %s461_s28 = scalar_lea.vmem %s45_s19, 2048  ;;  %p466_p6 = scmp.lt.s32.totalorder %s45_s19, %s45_s19 }
  0x2b   :  { %p462_p5 = scmp.ne.s32.totalorder %s45_s19, %s461_s28  ;;  %p467_p7 = scmp.lt.s32.totalorder %s461_s28, %s461_s28 }
  0x2d   :  { %p468_p8 = por %p467_p7, %p466_p6 }
  0x2f   :  { %p469_p9 = pnand %p468_p8, %p462_p5 }
  0x31   :  { %472 = shalt.err (!%p469_p9)
}
  0x32   :  { %50 = dma.hbm_to_vmem [thread:$0]  %s615_s3, 2048, %s45_s19, [#allocation6], %s503_s30, %s503_s30, %s504_s6  }
  0x33   :  { %495 = dma.done.wait [#allocation3], 256  }
  0x34   :  { %496 = vsyncadd [#allocation3], 4294967040 }
  0x35   :  { %497 = dma.done.wait [#allocation6], 2560  }
  0x36   :  { %498 = vsyncadd [#allocation6], 4294964736  ;;  %vm75_vm0 = vcmask 261120   ;;  %v64_v0 = vld [vmem:[#allocation5] sm:$0xff]  ;;  %v65_v1 = vld [vmem:[#allocation5 + $0x8] sm:$0xff] }
  0x37   :  { %v66_v2 = vld [vmem:[#allocation5 + $0x10] sm:$0xff]  ;;  %v353_v3 = vpack.c.bf16 %v65_v1, %v64_v0  ;;  %v67_v4 = vld [vmem:[#allocation5 + $0x18] sm:$0xff]  ;;  %v159_v7 = vld [vmem:[#allocation7] sm:$0xff] }
  0x38   :  { %v62_v5 = vld [vmem:[#allocation2] sm:$0xff]  ;;  %v357_v6 = vpack.c.bf16 %v67_v4, %v66_v2  ;;  %v160_v8 = vld [vmem:[#allocation7 + $0x8] sm:$0xff]  ;;  %v162_v11 = vld [vmem:[#allocation7 + $0x18] sm:$0xff] }
  0x39   :  { %315 = vmatprep.mubr.msk.f32.mxu0 %vm75_vm0, %v62_v5  ;;  %v161_v9 = vld [vmem:[#allocation7 + $0x10] sm:$0xff]  ;;  %354 = vmatprep.subr.bf16.mxu0 %v353_v3  ;;  %v361_v10 = vpack.c.bf16 %v160_v8, %v159_v7  ;;  %v163_v13 = vld [vmem:[#allocation7 + $0x20] sm:$0xff]  ;;  %v164_v14 = vld [vmem:[#allocation7 + $0x28] sm:$0xff] }
  0x3a   :  { %356 = vmatpush3.bf16.msra.mxu0 %v353_v3  ;;  %v365_v12 = vpack.c.bf16 %v162_v11, %v161_v9  ;;  %v369_v15 = vpack.c.bf16 %v164_v14, %v163_v13  ;;  %v63_v16 = vld [vmem:[#allocation2 + $0x8] sm:$0xff]  ;;  %v165_v17 = vld [vmem:[#allocation7 + $0x30] sm:$0xff]  ;;  %v167_v20 = vld [vmem:[#allocation7 + $0x40] sm:$0xff] }
  0x3b   :  { %358 = vmatprep.subr.bf16.mxu0 %v357_v6  ;;  %362 = vmatprep.subr.bf16.mxu1 %v361_v10  ;;  %v166_v18 = vld [vmem:[#allocation7 + $0x38] sm:$0xff]  ;;  %v168_v21 = vld [vmem:[#allocation7 + $0x48] sm:$0xff]  ;;  %v169_v23 = vld [vmem:[#allocation7 + $0x50] sm:$0xff] }
  0x3c   :  { %364 = vmatpush3.bf16.msra.mxu1 %v361_v10  ;;  %v373_v19 = vpack.c.bf16 %v166_v18, %v165_v17  ;;  %v377_v22 = vpack.c.bf16 %v168_v21, %v167_v20  ;;  %v170_v24 = vld [vmem:[#allocation7 + $0x58] sm:$0xff]  ;;  %v171_v26 = vld [vmem:[#allocation7 + $0x60] sm:$0xff]  ;;  %v172_v27 = vld [vmem:[#allocation7 + $0x68] sm:$0xff] }
  0x3d   :  { %366 = vmatprep.subr.bf16.mxu1 %v365_v12  ;;  %v381_v25 = vpack.c.bf16 %v170_v24, %v169_v23  ;;  %v173_v28 = vld [vmem:[#allocation7 + $0x70] sm:$0xff]  ;;  %v385_v29 = vpack.c.bf16 %v172_v27, %v171_v26  ;;  %v174_v30 = vld [vmem:[#allocation7 + $0x78] sm:$0xff] }
  0x3e   :  { %360 = vmatpush3.bf16.msra.mxu0 %v357_v6  ;;  %v389_v31 = vpack.c.bf16 %v174_v30, %v173_v28  ;;  %v279_v32 = vld [vmem:[%s614_s2] ss:$0 sm:$0xff]  ;;  %s506_s2 = smov [#allocation8]  }
  0x3f   :  { %v282_v39 = vld [vmem:[%s616_s4] ss:$0 sm:$0xff]  ;;  %s266_s9 = sshll.u32 %s506_s2, 4  ;;  %s267_s9 = int_to_ptr.vmem [resolvable:$true] %s266_s9 }
  0x40   :  { %368 = vmatpush3.bf16.msra.mxu1 %v365_v12  ;;  %s473_s10 = scalar_lea.vmem %s267_s9, 256  ;;  %p478_p11 = scmp.lt.s32.totalorder %s267_s9, %s267_s9 }
  0x41   :  { %316 = vmatmul.mubr.msk.f32.vlgmr.msra.gmra.mrb[0].mxu0 %vm75_vm0, %v63_v16  ;;  %370 = vmatprep.subr.bf16.mxu1 %v369_v15  ;;  %p474_p10 = scmp.ne.s32.totalorder %s267_s9, %s473_s10  ;;  %p479_p12 = scmp.lt.s32.totalorder %s473_s10, %s473_s10 }
  0x43   :  { %p480_p13 = por %p479_p12, %p478_p11 }
  0x44   :  { %372 = vmatpush3.bf16.msra.mxu1 %v369_v15 }
  0x45   :  { %374 = vmatprep.subr.bf16.mxu1 %v373_v19  ;;  %p481_p0 = pnand %p480_p13, %p474_p10 }
  0x48   :  { %376 = vmatpush3.bf16.msra.mxu1 %v373_v19 }
  0x49   :  { %378 = vmatprep.subr.bf16.mxu1 %v377_v22 }
  0x4c   :  { %380 = vmatpush3.bf16.msra.mxu1 %v377_v22 }
  0x4d   :  { %382 = vmatprep.subr.bf16.mxu1 %v381_v25 }
  0x50   :  { %384 = vmatpush3.bf16.msra.mxu1 %v381_v25 }
  0x51   :  { %386 = vmatprep.subr.bf16.mxu1 %v385_v29 }
  0x54   :  { %388 = vmatpush3.bf16.msra.mxu1 %v385_v29 }
  0x55   :  { %390 = vmatprep.subr.bf16.mxu1 %v389_v31 }
  0x58   :  { %392 = vmatpush3.bf16.msra.mxu1 %v389_v31 }
 0x114   :  { %v317_v33 = vpop.f32.mrb[0].mxu0 }
 0x115   :  { %v154_v34 = vadd.f32 %v317_v33, %v279_v32  ;;  %v148_v35 = vpop.f32.mrb[1].mxu0 }
 0x116   :  { %v149_v36 = vadd.f32 %v279_v32, %v148_v35 }
 0x118   :  { %399 = vtanh.f32 %v149_v36 }
 0x119   :  { %401 = vtanh.f32 %v154_v34 }
 0x122   :  { %v400_v37 = vpop.eup %399 }
 0x123   :  { %v402_v38 = vpop.eup %401  ;;  %350 = vmatprep.mubr.f32.mxu1 %v400_v37 }
 0x124   :  { %351 = vmatmul.mubr.f32.vlgmr.msra.gmra.mrb[0].mxu1 %v402_v38 }
 0x1f7   :  { %v352_v40 = vpop.f32.mrb[0].mxu1 }
 0x1f8   :  { %v254_v41 = vadd.f32 %v352_v40, %v282_v39  ;;  %v248_v42 = vpop.f32.mrb[1].mxu1 }
 0x1f9   :  { %v249_v43 = vadd.f32 %v282_v39, %v248_v42 }
 0x1fa   :  { %403 = vtanh.f32 %v254_v41 }
 0x1fb   :  { %405 = vtanh.f32 %v249_v43 }
 0x204   :  { %v404_v44 = vpop.eup %403 }
 0x205   :  { %v406_v45 = vpop.eup %405  ;;  %260 = vst [vmem:[#allocation8 + $0x8] sm:$0xff] %v404_v44 }
 0x206   :  { %259 = vst [vmem:[#allocation8] sm:$0xff] %v406_v45 }
 0x207   :  { %484 = shalt.err (!%p481_p0)
}
 0x208   :  { %s485_s12 = scalar_lea.hbm %s617_s5, 256 }
 0x209   :  { %p486_p1 = scmp.ne.s32.totalorder %s617_s5, %s485_s12  ;;  %p489_p2 = scmp.lt.u32.totalorder %s485_s12, %s617_s5 }
 0x20b   :  { %p491_p3 = pnand %p489_p2, %p486_p1 }
 0x20d   :  { %494 = shalt.err (!%p491_p3)
}
 0x20e   :  { %272 = dma.vmem_to_hbm [thread:$0]  %s267_s9, 256, %s617_s5, [#allocation4], %s503_s30, %s503_s30, %s504_s6  }
 0x20f   :  { %499 = dma.done.wait [#allocation4], 256  }
 0x210   :  { %500 = vsyncadd [#allocation4], 4294967040 }
 0x211   :  { %276 = vsyncpa [#allocation3], 1 }
 0x212   :  { %277 = vsyncpa [#allocation6], 1 }
 0x213   :  { %278 = vsyncpa [#allocation4], 1 }

</bundles_post_ra>
